<compile_context>
chip_gen: v7x
topology: tpu7x:2x2x1
jax: 0.10.0
libtpu: 0.0.40
codegen_flags: <defaults>
</compile_context>

<pallas_src>
import functools
import math

import jax
import jax.numpy as jnp
from jax import lax
from jax.experimental import pallas as pl
from jax.experimental.pallas import tpu as pltpu


# ------------------------------- kernels ----------------------------------- #

def _pe_add_kernel(x_ref, pe_ref, o_ref, *, batch_per_block, d):
    """o = x + pe  (pe broadcast over the batch entries packed along lanes)."""
    pe = pe_ref[...]
    if batch_per_block == 1:
        o_ref[...] = (x_ref[...] + pe).astype(o_ref.dtype)
    elif d % 128 == 0:
        # Static, lane-aligned slices of width D: no block-sized jnp.tile temp.
        for b in range(batch_per_block):
            sl = slice(b * d, (b + 1) * d)
            o_ref[:, sl] = (x_ref[:, sl] + pe).astype(o_ref.dtype)
    else:
        # Unaligned D: fall back to a materialized broadcast (small shapes only).
        o_ref[...] = (x_ref[...] + jnp.tile(pe, (1, batch_per_block))).astype(o_ref.dtype)


def _dropout_threshold(p):
    return jnp.uint32(min(int(round(p * 4294967296.0)), 0xFFFFFFFF))


def _pe_add_dropout_hw_kernel(seed_ref, x_ref, pe_ref, o_ref, *,
                              batch_per_block, d, p):
    """o = dropout(x + pe) using the TPU hardware PRNG (per-block seeding)."""
    ts, bdb = x_ref.shape
    pltpu.prng_seed(seed_ref[0], pl.program_id(0), pl.program_id(1))

    threshold = _dropout_threshold(p)
    scale = jnp.asarray(1.0 / (1.0 - p), x_ref.dtype)
    zero = jnp.asarray(0.0, x_ref.dtype)
    pe = pe_ref[...]

    if batch_per_block > 1 and d % 128 == 0:
        for b in range(batch_per_block):
            sl = slice(b * d, (b + 1) * d)
            bits = pltpu.bitcast(pltpu.prng_random_bits((ts, d)), jnp.uint32)
            keepmul = jnp.where(bits >= threshold, scale, zero)
            o_ref[:, sl] = ((x_ref[:, sl] + pe) * keepmul).astype(o_ref.dtype)
    else:
        y = x_ref[...] + (pe if batch_per_block == 1
                          else jnp.tile(pe, (1, batch_per_block)))
        bits = pltpu.bitcast(pltpu.prng_random_bits((ts, bdb)), jnp.uint32)
        keepmul = jnp.where(bits >= threshold, scale, zero)
        o_ref[...] = (y * keepmul).astype(o_ref.dtype)


def _pe_add_dropout_hash_kernel(seed_ref, x_ref, pe_ref, o_ref, *,
                                batch_per_block, d, p, total_bd):
    """Portable fallback: stateless multiplicative hash of the global index.

    Hoisted scalar base + single mul/add index build + 2-round hash keeps this
    to ~10 VPU ops/element (vs ~20+ in the original 3-round lowbias hash).
    TODO(synk): the 32-bit linear index wraps for tensors > 2**32 elements.
    """
    ts, bdb = x_ref.shape
    threshold = _dropout_threshold(p)
    scale = jnp.asarray(1.0 / (1.0 - p), x_ref.dtype)
    zero = jnp.asarray(0.0, x_ref.dtype)
    pe = pe_ref[...]

    # Scalar (per-block) base with the seed folded in: one broadcast add total.
    row0 = pl.program_id(0).astype(jnp.uint32) * jnp.uint32(ts)
    col0 = pl.program_id(1).astype(jnp.uint32) * jnp.uint32(bdb)
    base = (row0 * jnp.uint32(total_bd) + col0
            + seed_ref[0].astype(jnp.uint32) * jnp.uint32(0x85EBCA77))

    rows = lax.broadcasted_iota(jnp.uint32, (ts, bdb), 0)
    cols = lax.broadcasted_iota(jnp.uint32, (ts, bdb), 1)
    v = rows * jnp.uint32(total_bd) + (cols + base)
    h = v * jnp.uint32(0x9E3779B1)
    h = h ^ (h >> 16)
    h = h * jnp.uint32(0x7FEB352D)
    h = h ^ (h >> 13)
    keepmul = jnp.where(h >= threshold, scale, zero)

    if batch_per_block > 1 and d % 128 == 0:
        for b in range(batch_per_block):
            sl = slice(b * d, (b + 1) * d)
            o_ref[:, sl] = ((x_ref[:, sl] + pe) * keepmul[:, sl]).astype(o_ref.dtype)
    else:
        y = x_ref[...] + (pe if batch_per_block == 1
                          else jnp.tile(pe, (1, batch_per_block)))
        o_ref[...] = (y * keepmul).astype(o_ref.dtype)


# ---------------------------- buffers / tiling ------------------------------ #

def make_pe_buffer(d_model: int, max_len: int = 5000) -> jnp.ndarray:
    """Sinusoidal buffer, shape (max_len, 1, d_model), same as the PyTorch module."""
    position = jnp.arange(max_len, dtype=jnp.float32)[:, None]
    div_term = jnp.exp(
        jnp.arange(0, d_model, 2, dtype=jnp.float32) * (-math.log(10000.0) / d_model)
    )
    pe = jnp.zeros((max_len, 1, d_model), jnp.float32)
    pe = pe.at[:, 0, 0::2].set(jnp.sin(position * div_term))
    pe = pe.at[:, 0, 1::2].set(jnp.cos(position * div_term))
    return pe


def _choose_tiles(S, B, D, itemsize, target_bytes=3 * 1024 * 1024):
    """Pick (seq_rows, batches_per_block).

    The lane tile is batches_per_block * D (whole batch entries), so the pe
    block is always a single (rows, D) tile regardless of lane tiling. Blocks
    target ~target_bytes of x each; rows are a multiple of 8 (or == S).
    """
    row_bytes_full = B * D * itemsize
    if D % 128 == 0 and row_bytes_full > target_bytes // 8:
        bpb = max(1, (target_bytes // 8) // (D * itemsize))
        bpb = min(bpb, B)
        while B % bpb:          # keep lane blocks an exact divisor of B*D
            bpb -= 1
    else:
        bpb = B

    row_bytes = max(bpb * D * itemsize, 1)
    if S <= 8:
        rows = S
    else:
        rows = max(8, target_bytes // row_bytes)
        rows = min(S, (rows // 8) * 8)
        rows = max(rows, 8)
    return int(rows), int(bpb)


# -------------------------------- wrapper ----------------------------------- #

def positional_encoding(x, pe, *, p: float = 0.1, training: bool = False,
                        seed: int = 0, prng_impl: str = "auto"):
    """Forward pass: dropout(x + pe[:S]).

    x:  (S, B, D), any float dtype (compute stays in x.dtype).
    pe: (max_len, 1, D) float32 buffer from make_pe_buffer.
    prng_impl: "hw" (TPU hardware PRNG), "hash" (stateless), or "auto"
               (hw with automatic fallback to hash).
    """
    S, B, D = x.shape
    dtype = x.dtype

    if training and p >= 1.0:
        return jnp.zeros_like(x)   # torch.nn.Dropout(p=1) drops everything

    BD = B * D
    x2d = jnp.reshape(x, (S, BD))
    pe2d = pe[:, 0, :].astype(dtype)            # (max_len, D), pre-cast to x dtype

    itemsize = jnp.dtype(dtype).itemsize
    ts, bpb = _choose_tiles(S, B, D, itemsize)
    bdb = bpb * D

    if ts % 8 != 0:
        # Tiny S (single seq tile): make the pe block's row dim equal the full
        # array dim so the (8, 128) block-shape rule is satisfied.
        pe2d = pe2d[:S]

    grid = (pl.cdiv(S, ts), pl.cdiv(BD, bdb))

    x_spec = pl.BlockSpec((ts, bdb), lambda i, j, *_: (i, j))
    pe_spec = pl.BlockSpec((ts, D), lambda i, j, *_: (i, 0))
    o_spec = pl.BlockSpec((ts, bdb), lambda i, j, *_: (i, j))
    out_shape = jax.ShapeDtypeStruct((S, BD), dtype)

    # Explicit VMEM budget: 2x (double-buffer) * (x block + out block + pe block).
    block_bytes = 2 * (2 * ts * bdb * itemsize + ts * D * itemsize)
    vmem_limit = int(min(64 << 20, max(32 << 20, block_bytes + (4 << 20))))

    # TODO(synk): on v7x, if plain "parallel" does not shard the seq axis across
    # both TensorCores, switch the first axis to pltpu.CORE_PARALLEL.
    compiler_params = pltpu.CompilerParams(
        dimension_semantics=("parallel", "parallel"),
        vmem_limit_bytes=vmem_limit,
    )

    if (not training) or p == 0.0:
        out2d = pl.pallas_call(
            functools.partial(_pe_add_kernel, batch_per_block=bpb, d=D),
            out_shape=out_shape,
            grid_spec=pltpu.PrefetchScalarGridSpec(
                num_scalar_prefetch=0,
                grid=grid,
                in_specs=[x_spec, pe_spec],
                out_specs=o_spec,
            ),
            compiler_params=compiler_params,
        )(x2d, pe2d)
        return jnp.reshape(out2d, (S, B, D))

    seed_arr = jnp.asarray([seed], jnp.int32)

    def run(impl):
        if impl == "hw":
            kernel = functools.partial(
                _pe_add_dropout_hw_kernel, batch_per_block=bpb, d=D, p=p)
        else:
            kernel = functools.partial(
                _pe_add_dropout_hash_kernel, batch_per_block=bpb, d=D, p=p,
                total_bd=BD)
        out2d = pl.pallas_call(
            kernel,
            out_shape=out_shape,
            grid_spec=pltpu.PrefetchScalarGridSpec(
                num_scalar_prefetch=1,
                grid=grid,
                in_specs=[x_spec, pe_spec],
                out_specs=o_spec,
            ),
            compiler_params=compiler_params,
        )(seed_arr, x2d, pe2d)
        return jnp.reshape(out2d, (S, B, D))

    if prng_impl == "auto":
        try:
            return jax.block_until_ready(run("hw"))
        except Exception:
            # Backend without a hardware-PRNG lowering (e.g. interpret mode).
            return run("hash")
    return run(prng_impl)


# ------------------------------- self-check --------------------------------- #

if __name__ == "__main__":
    seq_len, batch, d_model = 16, 2, 128   # lane-dense output (B*D = 256)
    max_len = 64
    p = 0.1

    key = jax.random.PRNGKey(0)
    x = jax.random.normal(key, (seq_len, batch, d_model), dtype=jnp.float32)
    pe = make_pe_buffer(d_model, max_len)
    y_ref = x + pe[:seq_len]

    # Eval mode (dropout is identity): exact check against plain JAX.
    y_eval = jax.block_until_ready(positional_encoding(x, pe, p=p, training=False))
    assert y_eval.shape == (seq_len, batch, d_model)
    assert jnp.allclose(y_eval, y_ref, atol=1e-6, rtol=1e-6)

    # bf16 input: pe is pre-cast, compute stays bf16 inside the kernel.
    xb = x.astype(jnp.bfloat16)
    y_bf16 = jax.block_until_ready(positional_encoding(xb, pe, p=p, training=False))
    assert y_bf16.dtype == jnp.bfloat16
    assert jnp.allclose(y_bf16.astype(jnp.float32), y_ref, atol=6e-2, rtol=6e-2)

    # Training mode: hardware-PRNG dropout (auto-falls back to the hash path if
    # the backend lacks a PRNG lowering). Every element must be 0 or scaled-kept.
    y_train = jax.block_until_ready(
        positional_encoding(x, pe, p=p, training=True, seed=1234))
    assert y_train.shape == (seq_len, batch, d_model)
    assert y_train.dtype == x.dtype
    scaled = y_ref / (1.0 - p)
    is_zero = jnp.isclose(y_train, 0.0, atol=1e-6)
    is_kept = jnp.isclose(y_train, scaled, atol=1e-4, rtol=1e-4)
    assert bool(jnp.all(is_zero | is_kept))
    n_dropped = int(jnp.sum(is_zero & ~is_kept))
    assert 0 < n_dropped < y_train.size   # some, but not all, elements dropped

    print("KERNEL_OK")
</pallas_src>

<mosaic_0001>
module attributes {stable_mosaic.version = 11 : i64} {
  func.func @_pe_add_kernel(%arg0: i32, %arg1: i32, %arg2: memref<16x256xf32, #tpu.memory_space<vmem>>, %arg3: memref<16x128xf32, #tpu.memory_space<vmem>>, %arg4: memref<16x256xf32, #tpu.memory_space<vmem>>) attributes {dimension_semantics = [#tpu.dimension_semantics<parallel>, #tpu.dimension_semantics<parallel>], iteration_bounds = array<i64: 1, 1>, scalar_prefetch = 0 : i64, scratch_operands = 0 : i64, tpu.core_type = #tpu.core_type<tc>, window_params = [{transform_indices = @transform_0, window_bounds = array<i64: 16, 256>}, {transform_indices = @transform_1, window_bounds = array<i64: 16, 128>}, {transform_indices = @transform_2, window_bounds = array<i64: 16, 256>}]} {
    %c0 = arith.constant 0 : index
    %c0_0 = arith.constant 0 : index
    %0 = vector.load %arg3[%c0, %c0_0] : memref<16x128xf32, #tpu.memory_space<vmem>>, vector<16x128xf32>
    %c0_1 = arith.constant 0 : index
    %c0_2 = arith.constant 0 : index
    %1 = vector.load %arg2[%c0_1, %c0_2] : memref<16x256xf32, #tpu.memory_space<vmem>>, vector<16x128xf32>
    %2 = arith.addf %1, %0 : vector<16x128xf32>
    %c0_3 = arith.constant 0 : index
    %c0_4 = arith.constant 0 : index
    %3 = vector.load %arg4[%c0_3, %c0_4] : memref<16x256xf32, #tpu.memory_space<vmem>>, vector<16x128xf32>
    tpu.vector_store %arg4[%c0_3, %c0_4], %2 {strides = array<i32>} : memref<16x256xf32, #tpu.memory_space<vmem>>, vector<16x128xf32>,
    %c0_5 = arith.constant 0 : index
    %c128 = arith.constant 128 : index
    %4 = vector.load %arg2[%c0_5, %c128] : memref<16x256xf32, #tpu.memory_space<vmem>>, vector<16x128xf32>
    %5 = arith.addf %4, %0 : vector<16x128xf32>
    %c0_6 = arith.constant 0 : index
    %c128_7 = arith.constant 128 : index
    %6 = vector.load %arg4[%c0_6, %c128_7] : memref<16x256xf32, #tpu.memory_space<vmem>>, vector<16x128xf32>
    tpu.vector_store %arg4[%c0_6, %c128_7], %5 {strides = array<i32>} : memref<16x256xf32, #tpu.memory_space<vmem>>, vector<16x128xf32>,
    return
  }
  func.func @transform_0(%arg0: i32, %arg1: i32) -> (i32, i32) {
    %c0_i32 = arith.constant 0 : i32
    return %arg0, %arg1 : i32, i32
  }
  func.func @transform_1(%arg0: i32, %arg1: i32) -> (i32, i32) {
    %c0_i32 = arith.constant 0 : i32
    %c0_i32_0 = arith.constant 0 : i32
    return %arg0, %c0_i32 : i32, i32
  }
  func.func @transform_2(%arg0: i32, %arg1: i32) -> (i32, i32) {
    %c0_i32 = arith.constant 0 : i32
    return %arg0, %arg1 : i32, i32
  }
}

</mosaic_0001>

<bundles_post_ra>
// kernel: tpu_custom_call.1
= control target key start
LH: loop header
LB: loop body
LE: loop exit
PB: predicated region body
PF: predicated region fallthrough
CT: control target
= control target key end

     0   :  { %7 = vsyncpa [#allocation3], 0  ;;  %s218_s0 = inlined_call_operand.hbm [shape: f32[16,256], index: 0, kind: input, shape index: {}]   ;;  %s219_s1 = inlined_call_operand.hbm [shape: f32[64,128], index: 1, kind: input, shape index: {}]   ;;  %s220_s2 = inlined_call_operand.hbm [shape: f32[16,256], index: 2, kind: output, shape index: {}]  }
   0x1   :  { %8 = vsyncpa [#allocation6], 0 }
   0x2   :  { %9 = vsyncpa [#allocation4], 0  ;;  %s151_s9 = smov [#allocation2]   ;;  %s79_s13 = scalar_lea.hbm %s218_s0, 512 }
   0x3   :  { %s15_s10 = sshll.u32 %s151_s9, 4  ;;  %p80_p0 = scmp.ne.s32.totalorder %s218_s0, %s79_s13  ;;  %s16_s10 = int_to_ptr.vmem [resolvable:$true] %s15_s10 }
   0x4   :  { %p83_p1 = scmp.lt.u32.totalorder %s79_s13, %s218_s0 }
   0x6   :  { %p85_p2 = pnand %p83_p1, %p80_p0 }
   0x8   :  { %88 = shalt.err (!%p85_p2)
}
   0x9   :  { %s89_s18 = scalar_lea.vmem %s16_s10, 512  ;;  %p94_p4 = scmp.lt.s32.totalorder %s16_s10, %s16_s10 }
   0xa   :  { %p90_p3 = scmp.ne.s32.totalorder %s16_s10, %s89_s18  ;;  %p95_p5 = scmp.lt.s32.totalorder %s89_s18, %s89_s18 }
   0xc   :  { %p96_p6 = por %p95_p5, %p94_p4 }
   0xe   :  { %p97_p7 = pnand %p96_p6, %p90_p3 }
  0x10   :  { %100 = shalt.err (!%p97_p7)
}
  0x11   :  { %s152_s19 = smov 256   ;;  %s153_s20 = smov 16  }
  0x12   :  { %21 = dma.hbm_to_vmem [thread:$0]  %s218_s0, 512, %s16_s10, [#allocation3], %s152_s19, %s152_s19, %s153_s20  }
  0x13   :  { %s154_s23 = smov [#allocation5]   ;;  %s101_s27 = scalar_lea.hbm %s219_s1, 256 }
  0x14   :  { %s27_s24 = sshll.u32 %s154_s23, 4  ;;  %p102_p8 = scmp.ne.s32.totalorder %s219_s1, %s101_s27  ;;  %s28_s24 = int_to_ptr.vmem [resolvable:$true] %s27_s24 }
  0x15   :  { %s103_s4 = scalar_lea.hbm %s219_s1, 1024  ;;  %p105_p10 = scmp.lt.u32.totalorder %s101_s27, %s219_s1 }
  0x16   :  { %p104_p9 = scmp.lt.u32.totalorder %s103_s4, %s101_s27 }
  0x18   :  { %p106_p11 = por %p105_p10, %p104_p9 }
  0x1a   :  { %p107_p12 = pnand %p106_p11, %p102_p8 }
  0x1c   :  { %110 = shalt.err (!%p107_p12)
}
  0x1d   :  { %s111_s0 = scalar_lea.vmem %s28_s24, 256  ;;  %p116_p0 = scmp.lt.s32.totalorder %s28_s24, %s28_s24 }
  0x1e   :  { %p112_p13 = scmp.ne.s32.totalorder %s28_s24, %s111_s0  ;;  %p117_p1 = scmp.lt.s32.totalorder %s111_s0, %s111_s0 }
  0x20   :  { %p118_p2 = por %p117_p1, %p116_p0 }
  0x22   :  { %p119_p3 = pnand %p118_p2, %p112_p13 }
  0x24   :  { %122 = shalt.err (!%p119_p3)
}
  0x25   :  { %s155_s7 = smov 128   ;;  %s156_s8 = smov 8  }
  0x26   :  { %33 = dma.hbm_to_vmem [thread:$0]  %s219_s1, 256, %s28_s24, [#allocation6], %s155_s7, %s155_s7, %s156_s8  }
  0x27   :  { %145 = dma.done.wait [#allocation3], 512  }
  0x28   :  { %146 = vsyncadd [#allocation3], 4294966784 }
  0x29   :  { %147 = dma.done.wait [#allocation6], 256  }
  0x2a   :  { %148 = vsyncadd [#allocation6], 4294967040  ;;  %s157_s11 = smov [#allocation7]   ;;  %v40_v0 = vld [vmem:[#allocation5] sm:$0xff]  ;;  %v41_v2 = vld [vmem:[#allocation5 + $0x8] sm:$0xff] }
  0x2b   :  { %s59_s12 = sshll.u32 %s157_s11, 4  ;;  %v42_v1 = vld [vmem:[#allocation2] sm:$0xff]  ;;  %v43_v4 = vld [vmem:[#allocation2 + $0x10] sm:$0xff]  ;;  %v48_v5 = vld [vmem:[#allocation2 + $0x8] sm:$0xff]  ;;  %s60_s12 = int_to_ptr.vmem [resolvable:$true] %s59_s12 }
  0x2c   :  { %v44_v3 = vadd.f32 %v42_v1, %v40_v0  ;;  %v49_v6 = vld [vmem:[#allocation2 + $0x18] sm:$0xff]  ;;  %v45_v7 = vadd.f32 %v43_v4, %v41_v2  ;;  %v50_v8 = vadd.f32 %v48_v5, %v40_v0  ;;  %s123_s1 = scalar_lea.vmem %s60_s12, 512  ;;  %p128_p5 = scmp.lt.s32.totalorder %s60_s12, %s60_s12 }
  0x2d   :  { %v51_v9 = vadd.f32 %v49_v6, %v41_v2  ;;  %p124_p4 = scmp.ne.s32.totalorder %s60_s12, %s123_s1  ;;  %p129_p6 = scmp.lt.s32.totalorder %s123_s1, %s123_s1 }
  0x2e   :  { %46 = vst [vmem:[#allocation7] sm:$0xff] %v44_v3  ;;  %47 = vst [vmem:[#allocation7 + $0x10] sm:$0xff] %v45_v7 }
  0x2f   :  { %52 = vst [vmem:[#allocation7 + $0x8] sm:$0xff] %v50_v8  ;;  %53 = vst [vmem:[#allocation7 + $0x18] sm:$0xff] %v51_v9  ;;  %p130_p7 = por %p129_p6, %p128_p5 }
  0x31   :  { %p131_p8 = pnand %p130_p7, %p124_p4 }
  0x33   :  { %134 = shalt.err (!%p131_p8)
}
  0x34   :  { %s135_s15 = scalar_lea.hbm %s220_s2, 512 }
  0x35   :  { %p136_p9 = scmp.ne.s32.totalorder %s220_s2, %s135_s15  ;;  %p139_p10 = scmp.lt.u32.totalorder %s135_s15, %s220_s2 }
  0x37   :  { %p141_p11 = pnand %p139_p10, %p136_p9 }
  0x39   :  { %144 = shalt.err (!%p141_p11)
}
  0x3a   :  { %65 = dma.vmem_to_hbm [thread:$0]  %s60_s12, 512, %s220_s2, [#allocation4], %s152_s19, %s152_s19, %s153_s20  }
  0x3b   :  { %149 = dma.done.wait [#allocation4], 512  }
  0x3c   :  { %150 = vsyncadd [#allocation4], 4294966784 }
  0x3d   :  { %69 = vsyncpa [#allocation3], 1 }
  0x3e   :  { %70 = vsyncpa [#allocation6], 1 }
  0x3f   :  { %71 = vsyncpa [#allocation4], 1 }

</bundles_post_ra>
